<compile_context>
chip_gen: v7x
topology: tpu7x:2x2x1
jax: 0.10.0
libtpu: 0.0.40
codegen_flags: <defaults>
</compile_context>

<pallas_src>
import jax
import jax.numpy as jnp
from jax import lax
from jax.experimental import pallas as pl
from jax.experimental.pallas import tpu as pltpu

_LANE = 128


def _pad_to(x, m):
    return ((x + m - 1) // m) * m


def _pick_tiles(n_pad):
    """(row_tile, col_tile) for the n_pad x n_pad attention grid."""
    # Row axis is the "parallel" (megacore-shardable) axis: keep >= 4 blocks
    # whenever possible so both v7x TensorCores get work (v5e/v6e: 1 TC).
    tm = 256 if (n_pad % 256 == 0 and n_pad >= 1024) else 128
    # Column axis is the reduction/stream axis: larger tiles amortize the
    # ~0.35us per-grid-step overhead; keep >= 2 steps so the accumulator path
    # stays pipelined.  Tiles are bf16, so VMEM stays far below 64 MiB (v7x).
    tn = 128
    for cand in (512, 256):
        if n_pad % cand == 0 and n_pad // cand >= 2:
            tn = cand
            break
    return tm, tn


# --------------------------------------------------------------------------
# Stage 1: Wh = h @ W^T + b (stored bf16) and exact per-row inverse norms.
# --------------------------------------------------------------------------
def _wh_kernel(h_ref, w_ref, b_ref, wh_ref, inv_ref):
    wh = jnp.dot(h_ref[...], w_ref[...],
                 preferred_element_type=jnp.float32) + b_ref[...]
    # inverse norm from the f32 Wh (before the bf16 downcast); rsqrt(0) == inf
    # combines with min(.., 1e9) in stage 2 to reproduce the reference clamp
    # max(|Wh_i||Wh_j|, 1e-9) exactly.
    inv_ref[...] = lax.rsqrt(jnp.sum(wh * wh, axis=-1, keepdims=True))
    wh_ref[...] = wh.astype(wh_ref.dtype)


# --------------------------------------------------------------------------
# Stage 2: tiled NxN attention + signed propagation, accumulated over j.
# --------------------------------------------------------------------------
def _ggcn_tile_kernel(params_ref,
                      whr_ref, whc_ref, invr_ref, invc_ref, adj_ref, deg_ref,
                      out_ref):
    i = pl.program_id(0)
    j = pl.program_id(1)

    deg_a = params_ref[0]
    deg_b = params_ref[1]
    c0 = params_ref[2]          # softplus(scale) * softmax(coeff)[0]
    c1 = params_ref[3]          # softplus(scale) * softmax(coeff)[1]
    c2 = params_ref[4]          # softplus(scale) * softmax(coeff)[2]

    @pl.when(j == 0)
    def _init():
        out_ref[...] = jnp.zeros_like(out_ref)

    wh_row = whr_ref[...]                                # (TM, Fp) bf16
    wh_col = whc_ref[...]                                # (TN, Fp) bf16

    # Unnormalized Wh_i . Wh_j on the MXU: bf16 operands, f32 accumulation,
    # contracting the trailing dims (no transpose of Wh needed).
    prod = lax.dot_general(wh_row, wh_col, (((1,), (1,)), ((), ())),
                           preferred_element_type=jnp.float32)   # (TM, TN)

    # Cosine normalization with the reference clamp:
    #   prod / max(|Wh_i||Wh_j|, 1e-9) == prod * min(inv_i * inv_j, 1e9)
    e = prod * jnp.minimum(invr_ref[...] * invc_ref[...], 1e9)

    # Zero the GLOBAL diagonal with an index mask (single matmul body,
    # no i==j / i!=j branch duplication).
    rg = lax.broadcasted_iota(jnp.int32, e.shape, 0) + i * e.shape[0]
    cg = lax.broadcasted_iota(jnp.int32, e.shape, 1) + j * e.shape[1]
    e = jnp.where(rg == cg, 0.0, e)

    # Degree scaling + adjacency mask; the bf16 HBM streams are upcast
    # in-register.
    sc = jax.nn.softplus(deg_a * deg_ref[...].astype(jnp.float32) + deg_b)
    att = e * adj_ref[...].astype(jnp.float32) * sc

    # Exact fold of scale*(c0*relu(att) + c1*(-relu(-att))) into ONE matmul:
    att = att * jnp.where(att > 0, c0, c1)

    out_ref[...] += jnp.dot(att.astype(jnp.bfloat16), wh_col,
                            preferred_element_type=jnp.float32)

    @pl.when(j == pl.num_programs(1) - 1)
    def _finalize():
        out_ref[...] += c2 * wh_row.astype(jnp.float32)


# --------------------------------------------------------------------------
# Wrapper
# --------------------------------------------------------------------------
def ggcn_layer(h, adj, degree_precompute, weight, bias, deg_coeff, coeff, scale):
    """Pallas GGCNlayer forward (use_degree=True, use_sign=True).

    h: [N, F_in]; adj, degree_precompute: [N, N]
    weight: [F_out, F_in] (torch Linear layout); bias: [F_out]
    deg_coeff: [2]; coeff: [3]; scale: [1]
    """
    n, f_in = h.shape
    f_out = weight.shape[0]
    n_pad = max(_pad_to(n, _LANE), _LANE)
    f_pad = max(_pad_to(f_out, _LANE), _LANE)
    tm, tn = _pick_tiles(n_pad)

    # ---- scalar glue: softmax(coeff), softplus(scale), fold scale into c* ----
    coeff_sm = jax.nn.softmax(coeff.astype(jnp.float32))
    scale_sp = jax.nn.softplus(scale.astype(jnp.float32))[0]
    params = jnp.concatenate(
        [deg_coeff.astype(jnp.float32), scale_sp * coeff_sm]
    ).astype(jnp.float32)                     # [deg_a, deg_b, c0', c1', c2']

    h32 = h.astype(jnp.float32)
    w_t = weight.T.astype(jnp.float32)        # [F_in, F_out]
    b32 = bias.astype(jnp.float32).reshape(1, f_out)

    # Lane-pad F_out to 128 (full vst / full MXU result lanes); zero-padded
    # weight columns & bias keep the math exact.  Row-pad N to a multiple of
    # 128 (padded adj/deg rows & cols are zero, so real rows are unaffected).
    if f_pad != f_out:
        w_t = jnp.pad(w_t, ((0, 0), (0, f_pad - f_out)))
        b32 = jnp.pad(b32, ((0, 0), (0, f_pad - f_out)))
    if n_pad != n:
        h32 = jnp.pad(h32, ((0, n_pad - n), (0, 0)))

    # Dominant HBM streams in bf16.
    adj_bf16 = adj.astype(jnp.bfloat16)
    deg_bf16 = degree_precompute.astype(jnp.bfloat16)
    if n_pad != n:
        pad = n_pad - n
        adj_bf16 = jnp.pad(adj_bf16, ((0, pad), (0, pad)))
        deg_bf16 = jnp.pad(deg_bf16, ((0, pad), (0, pad)))

    # ---- stage 1: Wh (bf16) + per-row inverse norms (f32), row-tiled ----
    wh, inv = pl.pallas_call(
        _wh_kernel,
        out_shape=(jax.ShapeDtypeStruct((n_pad, f_pad), jnp.bfloat16),
                   jax.ShapeDtypeStruct((n_pad, 1), jnp.float32)),
        grid=(n_pad // tm,),
        in_specs=[
            pl.BlockSpec((tm, f_in), lambda i: (i, 0)),
            pl.BlockSpec((f_in, f_pad), lambda i: (0, 0)),
            pl.BlockSpec((1, f_pad), lambda i: (0, 0)),
        ],
        out_specs=(
            pl.BlockSpec((tm, f_pad), lambda i: (i, 0)),
            pl.BlockSpec((tm, 1), lambda i: (i, 0)),
        ),
        compiler_params=pltpu.CompilerParams(
            dimension_semantics=("parallel",)),
    )(h32, w_t, b32)

    inv_t = inv.reshape(1, n_pad)             # column-side inverse norms

    # ---- stage 2: tiled NxN attention + propagation ----
    def _row_map(i, j, *_):
        return (i, 0)

    def _col_map(i, j, *_):
        return (j, 0)

    def _colvec_map(i, j, *_):
        return (0, j)

    def _tile_map(i, j, *_):
        return (i, j)

    grid_spec = pltpu.PrefetchScalarGridSpec(
        num_scalar_prefetch=1,
        grid=(n_pad // tm, n_pad // tn),
        in_specs=[
            pl.BlockSpec((tm, f_pad), _row_map),    # Wh row block  (bf16)
            pl.BlockSpec((tn, f_pad), _col_map),    # Wh col block  (bf16)
            pl.BlockSpec((tm, 1), _row_map),        # inv rows      (f32)
            pl.BlockSpec((1, tn), _colvec_map),     # inv cols      (f32)
            pl.BlockSpec((tm, tn), _tile_map),      # adj tile      (bf16)
            pl.BlockSpec((tm, tn), _tile_map),      # degree tile   (bf16)
        ],
        out_specs=pl.BlockSpec((tm, f_pad), _row_map),
    )

    out = pl.pallas_call(
        _ggcn_tile_kernel,
        out_shape=jax.ShapeDtypeStruct((n_pad, f_pad), jnp.float32),
        grid_spec=grid_spec,
        compiler_params=pltpu.CompilerParams(
            dimension_semantics=("parallel", "arbitrary")),
    )(params, wh, wh, inv, inv_t, adj_bf16, deg_bf16)

    return out[:n, :f_out]


# --------------------------------------------------------------------------
# Pure-JAX references.
# --------------------------------------------------------------------------
def _reference_f32(h, adj, deg, weight, bias, deg_coeff, coeff, scale):
    """Exact (f32) mirror of the torch module."""
    hp = lax.Precision.HIGHEST
    sc = jax.nn.softplus(deg_coeff[0] * deg + deg_coeff[1])
    wh = jnp.dot(h, weight.T, precision=hp) + bias
    prod = jnp.dot(wh, wh.T, precision=hp)
    sq = jnp.diag(prod)[:, None]
    scaling = sq * sq.T
    e = prod / jnp.maximum(jnp.sqrt(scaling), 1e-9)
    e = e - jnp.diag(jnp.diag(e))
    att = e * adj * sc
    c = jax.nn.softmax(coeff)
    s = jax.nn.softplus(scale)
    return s * (c[0] * jnp.dot(jax.nn.relu(att), wh, precision=hp)
                + c[1] * jnp.dot(-jax.nn.relu(-att), wh, precision=hp)
                + c[2] * wh)


def _reference_mixed(h, adj, deg, weight, bias, deg_coeff, coeff, scale):
    """Reference applying the SAME mixed precision as the kernel
    (bf16 adj/deg streams, bf16 MXU operands, f32 accumulation)."""
    hp = lax.Precision.HIGHEST
    f32, bf16 = jnp.float32, jnp.bfloat16
    wh = jnp.dot(h, weight.T, precision=hp) + bias
    inv = lax.rsqrt(jnp.sum(wh * wh, axis=-1, keepdims=True))
    whb = wh.astype(bf16)
    prod = jnp.dot(whb, whb.T, preferred_element_type=f32)
    e = prod * jnp.minimum(inv * inv.T, 1e9)
    e = jnp.where(jnp.eye(h.shape[0], dtype=bool), 0.0, e)
    adj_b = adj.astype(bf16).astype(f32)
    deg_b = deg.astype(bf16).astype(f32)
    sc = jax.nn.softplus(deg_coeff[0] * deg_b + deg_coeff[1])
    c = jax.nn.softmax(coeff)
    s = jax.nn.softplus(scale)[0]
    c0, c1, c2 = s * c[0], s * c[1], s * c[2]
    att = e * adj_b * sc
    att = att * jnp.where(att > 0, c0, c1)
    out = jnp.dot(att.astype(bf16), whb, preferred_element_type=f32)
    return out + c2 * whb.astype(f32)


if __name__ == "__main__":
    N, F_IN, F_OUT = 512, 64, 64
    key = jax.random.PRNGKey(0)
    k_h, k_w, k_b, k_adj, k_deg = jax.random.split(key, 5)

    h = jax.random.normal(k_h, (N, F_IN), dtype=jnp.float32)
    bound = 1.0 / (F_IN ** 0.5)
    weight = jax.random.uniform(k_w, (F_OUT, F_IN), minval=-bound, maxval=bound,
                                dtype=jnp.float32)
    bias = jax.random.uniform(k_b, (F_OUT,), minval=-bound, maxval=bound,
                              dtype=jnp.float32)
    # dense symmetric 0/1 adjacency without self loops, plus a degree term
    a = (jax.random.uniform(k_adj, (N, N)) < 0.1).astype(jnp.float32)
    adj = jnp.maximum(a, a.T) * (1.0 - jnp.eye(N, dtype=jnp.float32))
    degree_precompute = jax.random.uniform(k_deg, (N, N), dtype=jnp.float32)

    # learned parameters; coeff made asymmetric so the pos/neg fold and the
    # degree intercept are actually exercised.
    deg_coeff = jnp.array([0.5, 0.1], dtype=jnp.float32)
    coeff = jnp.array([0.5, -0.3, 0.1], dtype=jnp.float32)
    scale = 2.0 * jnp.ones((1,), dtype=jnp.float32)

    out = jax.block_until_ready(
        ggcn_layer(h, adj, degree_precompute, weight, bias,
                   deg_coeff, coeff, scale))
    assert out.shape == (N, F_OUT)

    # (1) strict check against the mixed-precision reference (same bf16
    #     casts as the kernel) -> validates the kernel logic itself.
    ref_mixed = _reference_mixed(h, adj, degree_precompute, weight, bias,
                                 deg_coeff, coeff, scale)
    err_mixed = float(jnp.max(jnp.abs(out - ref_mixed)))
    assert jnp.allclose(out, ref_mixed, atol=2e-3, rtol=2e-3), err_mixed

    # (2) loose sanity check against the exact f32 reference: the bf16
    #     streams / MXU operands cost a few 1e-3 absolute (intended trade-off).
    ref_f32 = _reference_f32(h, adj, degree_precompute, weight, bias,
                             deg_coeff, coeff, scale)
    err_f32 = float(jnp.max(jnp.abs(out - ref_f32)))
    assert jnp.allclose(out, ref_f32, atol=2e-2, rtol=2e-2), err_f32

    print("KERNEL_OK")
</pallas_src>

<mosaic_0001>
module attributes {stable_mosaic.version = 11 : i64} {
  func.func @_wh_kernel(%arg0: i32, %arg1: memref<128x64xf32, #tpu.memory_space<vmem>>, %arg2: memref<64x128xf32, #tpu.memory_space<vmem>>, %arg3: memref<1x128xf32, #tpu.memory_space<vmem>>, %arg4: memref<128x128xbf16, #tpu.memory_space<vmem>>, %arg5: memref<128x1xf32, #tpu.memory_space<vmem>>) attributes {dimension_semantics = [#tpu.dimension_semantics<parallel>], iteration_bounds = array<i64: 4>, scalar_prefetch = 0 : i64, scratch_operands = 0 : i64, tpu.core_type = #tpu.core_type<tc>, window_params = [{transform_indices = @transform_0, window_bounds = array<i64: 128, 64>}, {pipeline_mode = #tpu.pipeline_mode<synchronous>, transform_indices = @transform_1, window_bounds = array<i64: 64, 128>}, {pipeline_mode = #tpu.pipeline_mode<synchronous>, transform_indices = @transform_2, window_bounds = array<i64: 1, 128>}, {transform_indices = @transform_3, window_bounds = array<i64: 128, 128>}, {transform_indices = @transform_4, window_bounds = array<i64: 128, 1>}]} {
    %c0 = arith.constant 0 : index
    %c0_0 = arith.constant 0 : index
    %0 = vector.load %arg1[%c0, %c0_0] : memref<128x64xf32, #tpu.memory_space<vmem>>, vector<128x64xf32>
    %c0_1 = arith.constant 0 : index
    %c0_2 = arith.constant 0 : index
    %1 = vector.load %arg2[%c0_1, %c0_2] : memref<64x128xf32, #tpu.memory_space<vmem>>, vector<64x128xf32>
    %cst = arith.constant dense<0.000000e+00> : vector<128x128xf32>
    %2 = tpu.matmul %0, %1, %cst {dimension_numbers = #tpu.dot_dimension_numbers<[1], [0], [0], [1], [0, 0, 1, 1], [], []>} : vector<128x64xf32>, vector<64x128xf32>, vector<128x128xf32> -> vector<128x128xf32>
    %c0_3 = arith.constant 0 : index
    %c0_4 = arith.constant 0 : index
    %3 = vector.load %arg3[%c0_3, %c0_4] : memref<1x128xf32, #tpu.memory_space<vmem>>, vector<1x128xf32>
    %4 = vector.broadcast %3 : vector<1x128xf32> to vector<128x128xf32>
    %5 = arith.addf %2, %4 : vector<128x128xf32>
    %6 = arith.mulf %5, %5 : vector<128x128xf32>
    %cst_5 = arith.constant dense<0.000000e+00> : vector<128xf32>
    %7 = vector.multi_reduction <add>, %6, %cst_5 [1] : vector<128x128xf32> to vector<128xf32>
    %8 = vector.shape_cast %7 : vector<128xf32> to vector<128x1xf32>
    %9 = math.rsqrt %8 : vector<128x1xf32>
    %c0_6 = arith.constant 0 : index
    %c0_7 = arith.constant 0 : index
    %10 = vector.load %arg5[%c0_6, %c0_7] : memref<128x1xf32, #tpu.memory_space<vmem>>, vector<128x1xf32>
    tpu.vector_store %arg5[%c0_6, %c0_7], %9 {strides = array<i32>} : memref<128x1xf32, #tpu.memory_space<vmem>>, vector<128x1xf32>,
    %11 = arith.truncf %5 : vector<128x128xf32> to vector<128x128xbf16>
    %c0_8 = arith.constant 0 : index
    %c0_9 = arith.constant 0 : index
    %12 = vector.load %arg4[%c0_8, %c0_9] : memref<128x128xbf16, #tpu.memory_space<vmem>>, vector<128x128xbf16>
    tpu.vector_store %arg4[%c0_8, %c0_9], %11 {strides = array<i32>} : memref<128x128xbf16, #tpu.memory_space<vmem>>, vector<128x128xbf16>,
    return
  }
  func.func @transform_0(%arg0: i32) -> (i32, i32) {
    %c0_i32 = arith.constant 0 : i32
    %c0_i32_0 = arith.constant 0 : i32
    return %arg0, %c0_i32 : i32, i32
  }
  func.func @transform_1(%arg0: i32) -> (i32, i32) {
    %c0_i32 = arith.constant 0 : i32
    %c0_i32_0 = arith.constant 0 : i32
    %c0_i32_1 = arith.constant 0 : i32
    return %c0_i32, %c0_i32_0 : i32, i32
  }
  func.func @transform_2(%arg0: i32) -> (i32, i32) {
    %c0_i32 = arith.constant 0 : i32
    %c0_i32_0 = arith.constant 0 : i32
    %c0_i32_1 = arith.constant 0 : i32
    return %c0_i32, %c0_i32_0 : i32, i32
  }
  func.func @transform_3(%arg0: i32) -> (i32, i32) {
    %c0_i32 = arith.constant 0 : i32
    %c0_i32_0 = arith.constant 0 : i32
    return %arg0, %c0_i32 : i32, i32
  }
  func.func @transform_4(%arg0: i32) -> (i32, i32) {
    %c0_i32 = arith.constant 0 : i32
    %c0_i32_0 = arith.constant 0 : i32
    return %arg0, %c0_i32 : i32, i32
  }
}

</mosaic_0001>

<bundles_post_ra>
// kernel: tpu_custom_call.1
= control target key start
LH: loop header
LB: loop body
LE: loop exit
PB: predicated region body
PF: predicated region fallthrough
CT: control target
= control target key end

     0   :  { %10 = vsyncpa [#allocation3], 0  ;;  %s1295_s0 = inlined_call_operand.vmem [shape: f32[512,64], index: 0, kind: input, shape index: {}]   ;;  %s1296_s1 = inlined_call_operand.vmem [shape: f32[64,128], index: 1, kind: input, shape index: {}]   ;;  %s1297_s2 = inlined_call_operand.vmem [shape: f32[1,128], index: 2, kind: input, shape index: {}]   ;;  %s1298_s3 = inlined_call_operand.hbm [shape: bf16[512,128], index: 3, kind: output, shape index: {0}]   ;;  %s1299_s4 = inlined_call_operand.vmem [shape: f32[512,1], index: 4, kind: output, shape index: {1}]  }
   0x1   :  { %12 = vsyncpa [#allocation3 + $0x1], 0  ;;  %s1073_s15 = smov 0   ;;  %s1075_s16 = smov 0  }
   0x2   :  { %s1077_s17 = smov 0   ;;  %s1079_s18 = smov 0  }
   0x3 LB: > { %s1094_s19 = sadd.s32 4294967295, %s1043_s18   ;;  %s709_s20 = sadd.s32 4294967294, %s1043_s18   ;;  %s1043_s18 = sphi %s1079_s18, %s1305_s18   ;;  %s1039_s17 = sphi %s1077_s17, %s1304_s17   ;;  %s1035_s16 = sphi %s1075_s16, %s1303_s16   ;;  %s1031_s15 = sphi %s1073_s15, %s1302_s15  }
   0x4   : > { %s1098_s21 = sadd.s32 1, %s1043_s18   ;;  %s93_s22 = sadd.s32 1, %s1039_s17 }
   0x5   : > { %s90_s23 = ssub.s32 %s1043_s18, %s1098_s21  ;;  %p103_p0 = scmp.ne.s32.totalorder %s1039_s17, %s1035_s16 }
   0x6   : > { %p91_p1 = scmp.eq.s32.totalorder %s90_s23, 0  ;;  %p104_p2 = scmp.eq.s32.totalorder %s1094_s19, 3 }
   0x7   : > { %p109_p3 = scmp.ne.s32.totalorder %s1035_s16, %s1031_s15  ;;  %p110_p4 = scmp.eq.s32.totalorder %s709_s20, 3 }
   0x8   : > { %s1109_s24 = scalar_select %p91_p1, %s1039_s17, %s93_s22  }
   0x9   : > { %p1111_p5 = por %p104_p2, %p103_p0  ;;  %p1115_p6 = por %p110_p4, %p109_p3 }
   0xa   : > { %p712_p7 = scmp.ge.s32.totalorder %s1043_s18, 1  ;;  %p169_p8 = scmp.lt.s32.totalorder %s1043_s18, 5 }
   0xc   : > { %p170_p9 = pnand %p712_p7, %p169_p8 }
   0xd   : > { %v229_v0 = vld [vmem:[%s1296_s1] sm:$0xff] (!%p170_p9)  ;;  %v230_v1 = vld [vmem:[%s1296_s1 + $0x8] sm:$0xff] (!%p170_p9)  ;;  %v231_v2 = vld [vmem:[%s1296_s1 + $0x10] sm:$0xff] (!%p170_p9)  ;;  %s714_s7 = sshll.u32 (!%p170_p9), %s1094_s19, 4  ;;  %vm244_vm0 = vcmask (!%p170_p9), 523264   ;;  %s190_s5 = sand.u32 (!%p170_p9), 1, %s1035_s16  }
   0xe   : > { %173 = sbr.rel (%p170_p9) target bundleno = 432 (0x1b0), region = 32  ;;  %v884_v3 = vpack.c.bf16 (!%p170_p9), %v230_v1, %v229_v0  ;;  %v232_v4 = vld [vmem:[%s1296_s1 + $0x18] sm:$0xff] (!%p170_p9)  ;;  %p201_p10 = scmp.lt.s32.totalorder (!%p170_p9), %s714_s7, 63  ;;  %v233_v6 = vld [vmem:[%s1296_s1 + $0x20] sm:$0xff] (!%p170_p9)  ;;  %v234_v7 = vld [vmem:[%s1296_s1 + $0x28] sm:$0xff] (!%p170_p9) }
   0xf   : > { %v888_v5 = vpack.c.bf16 (!%p170_p9), %v232_v4, %v231_v2  ;;  %v892_v8 = vpack.c.bf16 (!%p170_p9), %v234_v7, %v233_v6  ;;  %v235_v9 = vld [vmem:[%s1296_s1 + $0x30] sm:$0xff] (!%p170_p9)  ;;  %v236_v10 = vld [vmem:[%s1296_s1 + $0x38] sm:$0xff] (!%p170_p9)  ;;  %v718_v28 = vld [vmem:[%s1297_s2] ss:$0 sm:$0xff] (!%p170_p9)  ;;  %s713_s9 = sshll.u32 (!%p170_p9), %s190_s5, 6  ;;  %s772_s11 = sshll.u32 (!%p170_p9), %s1094_s19, 10 }
  0x10   : > { %885 = vmatprep.subr.bf16.mxu0 (!%p170_p9), %v884_v3  ;;  %900 = vmatprep.subr.bf16.mxu1 (!%p170_p9), %v884_v3  ;;  %v896_v13 = vpack.c.bf16 (!%p170_p9), %v236_v10, %v235_v9  ;;  %s1194_s10 = scalar_lea.vmem (!%p170_p9), [#allocation2], %s713_s9  ;;  %s1209_s22 = scalar_lea.hbm (!%p170_p9), %s1298_s3, %s772_s11 }
  0x11   : > { %887 = vmatpush3.bf16.msra.mxu0 (!%p170_p9), %v884_v3  ;;  %904 = vmatpush3.bf16.msra.mxu1 (!%p170_p9), %v884_v3  ;;  %s618_s12 = sshll.u32 (!%p170_p9), %s1194_s10, 4  ;;  %s1215_s23 = scalar_lea.sflag (!%p170_p9), [#allocation3], %s190_s5  ;;  %s1211_s12 = int_to_ptr.vmem [resolvable:$true] %s618_s12 }
  0x12   : > { %889 = vmatprep.subr.bf16.mxu0 (!%p170_p9), %v888_v5  ;;  %901 = vmatprep.subr.bf16.mxu1 (!%p170_p9), %v888_v5  ;;  %s981_s27 = scalar_lea.vmem (!%p170_p9), %s1211_s12, 1024  ;;  %s1045_s19 = smov (!%p170_p9), [#allocation2]  }
  0x13   : > { %p982_p11 = scmp.ne.s32.totalorder (!%p170_p9), %s1211_s12, %s981_s27  ;;  %s985_s28 = sshll.u32 (!%p170_p9), %s1045_s19, 4  ;;  %s986_s28 = int_to_ptr.vmem [resolvable:$false] %s985_s28 }
  0x14   : > { %s987_s29 = scalar_lea.vmem (!%p170_p9), %s986_s28, 2048  ;;  %p988_p0 = scmp.lt.s32.totalorder (!%p170_p9), %s1211_s12, %s986_s28 }
  0x15   : > { %s1307_s7 = smov (!%p201_p10, %s714_s7), 63  ;;  %891 = vmatpush3.bf16.msra.mxu0 %v888_v5  ;;  %905 = vmatpush3.bf16.msra.mxu1 %v888_v5  ;;  %p983_p12 = pnand %p982_p11, %p1111_p5 }
  0x16   : > { %s715_s14 = sshll.u32 %s1307_s7, 3  ;;  %893 = vmatprep.subr.bf16.mxu0 %v892_v8  ;;  %902 = vmatprep.subr.bf16.mxu1 %v892_v8  ;;  %p989_p1 = scmp.lt.s32.totalorder %s987_s29, %s981_s27 }
  0x17   : > { %s1154_s30 = scalar_lea.vmem %s1295_s0, %s715_s14  ;;  %p984_p13 = pneg %p983_p12 }
  0x18   : > { %v213_v11 = vld [vmem:[%s1154_s30] sm:$0xff]  ;;  %v214_v14 = vld [vmem:[%s1154_s30 + $0x8] sm:$0xff]  ;;  %v215_v16 = vld [vmem:[%s1154_s30 + $0x10] sm:$0xff]  ;;  %p990_p2 = por %p989_p1, %p988_p0 }
  0x19   : > { %v221_v12 = vld [vmem:[%s1154_s30 + $0x40] sm:$0xff]  ;;  %860 = vmatprep.mubr.msk.f32.mxu0 %vm244_vm0, %v213_v11  ;;  %895 = vmatpush3.bf16.msra.mxu0 %v892_v8  ;;  %v222_v15 = vld [vmem:[%s1154_s30 + $0x48] sm:$0xff]  ;;  %v223_v17 = vld [vmem:[%s1154_s30 + $0x50] sm:$0xff] }
  0x1a   : > { %872 = vmatprep.mubr.msk.f32.mxu1 %vm244_vm0, %v221_v12  ;;  %906 = vmatpush3.bf16.msra.mxu1 %v892_v8  ;;  %v216_v18 = vld [vmem:[%s1154_s30 + $0x18] sm:$0xff]  ;;  %v217_v20 = vld [vmem:[%s1154_s30 + $0x20] sm:$0xff]  ;;  %v218_v22 = vld [vmem:[%s1154_s30 + $0x28] sm:$0xff]  ;;  %p991_p3 = pnand %p990_p2, %p984_p13 }
  0x1b   : > { %897 = vmatprep.subr.bf16.mxu0 %v896_v13  ;;  %903 = vmatprep.subr.bf16.mxu1 %v896_v13  ;;  %v224_v19 = vld [vmem:[%s1154_s30 + $0x58] sm:$0xff]  ;;  %v225_v21 = vld [vmem:[%s1154_s30 + $0x60] sm:$0xff]  ;;  %v226_v23 = vld [vmem:[%s1154_s30 + $0x68] sm:$0xff] }
  0x1c   : > { %v219_v24 = vld [vmem:[%s1154_s30 + $0x30] sm:$0xff]  ;;  %v220_v26 = vld [vmem:[%s1154_s30 + $0x38] sm:$0xff] }
  0x1d   : > { %899 = vmatpush3.bf16.msra.mxu0 %v896_v13  ;;  %v227_v25 = vld [vmem:[%s1154_s30 + $0x70] sm:$0xff]  ;;  %v228_v27 = vld [vmem:[%s1154_s30 + $0x78] sm:$0xff] }
  0x1e   : > { %907 = vmatpush3.bf16.msra.mxu1 %v896_v13 }
  0x20   : > { %861 = vmatmul.mubr.msk.f32.vlgmr.msra.gmra.mrb[0].mxu0 %vm244_vm0, %v214_v14 }
  0x21   : > { %873 = vmatmul.mubr.msk.f32.vlgmr.msra.gmra.mrb[0].mxu1 %vm244_vm0, %v222_v15  ;;  %863 = vmatprep.mubr.msk.f32.mxu0 %vm244_vm0, %v215_v16 }
  0x22   : > { %875 = vmatprep.mubr.msk.f32.mxu1 %vm244_vm0, %v223_v17 }
  0x24   : > { %864 = vmatmul.mubr.msk.f32.gmra.mrb[2].mxu0 %vm244_vm0, %v216_v18 }
  0x25   : > { %876 = vmatmul.mubr.msk.f32.gmra.mrb[2].mxu1 %vm244_vm0, %v224_v19  ;;  %866 = vmatprep.mubr.msk.f32.mxu0 %vm244_vm0, %v217_v20 }
  0x26   : > { %878 = vmatprep.mubr.msk.f32.mxu1 %vm244_vm0, %v225_v21 }
  0x28   : > { %867 = vmatmul.mubr.msk.f32.gmra.mrb[4].mxu0 %vm244_vm0, %v218_v22 }
  0x29   : > { %879 = vmatmul.mubr.msk.f32.gmra.mrb[4].mxu1 %vm244_vm0, %v226_v23  ;;  %869 = vmatprep.mubr.msk.f32.mxu0 %vm244_vm0, %v219_v24 }
  0x2a   : > { %881 = vmatprep.mubr.msk.f32.mxu1 %vm244_vm0, %v227_v25 }
  0x2c   : > { %870 = vmatmul.mubr.msk.f32.gmra.mrb[6].mxu0 %vm244_vm0, %v220_v26 }
  0x2d   : > { %882 = vmatmul.mubr.msk.f32.gmra.mrb[6].mxu1 %vm244_vm0, %v228_v27 }
  0xf3   : > { %v862_v29 = vpop.f32.mrb[0].mxu0 }
  0xf4   : > { %v874_v30 = vpop.f32.mrb[0].mxu1  ;;  %v365_v31 = vadd.f32 %v862_v29, %v718_v28  ;;  %v359_v33 = vpop.f32.mrb[1].mxu0 }
  0xf5   : > { %v405_v32 = vadd.f32 %v874_v30, %v718_v28  ;;  %v399_v34 = vpop.f32.mrb[1].mxu1  ;;  %v360_v35 = vadd.f32 %v718_v28, %v359_v33 }
  0xf6   : > { %v400_v36 = vadd.f32 %v718_v28, %v399_v34  ;;  %v439_v38 = vmul.f32 %v365_v31, %v365_v31 }
  0xf7   : > { %v447_v37 = vmul.f32 %v405_v32, %v405_v32  ;;  %v776_v39 = vpack.c.bf16 %v365_v31, %v360_v35  ;;  %v865_v41 = vpop.f32.mrb[2].mxu0  ;;  %v438_v50 = vmul.f32 %v360_v35, %v360_v35 }
  0xf8   : > { %v796_v40 = vpack.c.bf16 %v405_v32, %v400_v36  ;;  %v877_v42 = vpop.f32.mrb[2].mxu1  ;;  %v375_v43 = vadd.f32 %v865_v41, %v718_v28  ;;  %456 = vadd.xlane.f32.xlu0 %v439_v38  ;;  %v369_v44 = vpop.f32.mrb[3].mxu0  ;;  %v446_v62 = vmul.f32 %v400_v36, %v400_v36 }
  0xf9   : > { %472 = vadd.xlane.f32.xlu1 %v447_v37  ;;  %v415_v45 = vadd.f32 %v877_v42, %v718_v28  ;;  %v409_v46 = vpop.f32.mrb[3].mxu1  ;;  %777 = vst [vmem:[%s1194_s10] sm:$0xff] %v776_v39   ;;  %v370_v47 = vadd.f32 %v718_v28, %v369_v44 }
  0xfa   : > { %816 = vst [vmem:[%s1194_s10 + $0x20] sm:$0xff] %v796_v40   ;;  %v410_v48 = vadd.f32 %v718_v28, %v409_v46  ;;  %v441_v49 = vmul.f32 %v375_v43, %v375_v43 }
  0xfb   : > { %v781_v51 = vpack.c.bf16 %v375_v43, %v370_v47  ;;  %v868_v53 = vpop.f32.mrb[4].mxu0  ;;  %v449_v55 = vmul.f32 %v415_v45, %v415_v45  ;;  %v440_v9 = vmul.f32 %v370_v47, %v370_v47 }
  0xfc   : > { %v801_v52 = vpack.c.bf16 %v415_v45, %v410_v48  ;;  %v880_v54 = vpop.f32.mrb[4].mxu1  ;;  %454 = vadd.xlane.f32.xlu0 %v438_v50  ;;  %v385_v56 = vadd.f32 %v868_v53, %v718_v28  ;;  %v379_v57 = vpop.f32.mrb[5].mxu0  ;;  %v448_v10 = vmul.f32 %v410_v48, %v410_v48 }
  0xfd   : > { %460 = vadd.xlane.f32.xlu1 %v441_v49  ;;  %v425_v58 = vadd.f32 %v880_v54, %v718_v28  ;;  %v419_v59 = vpop.f32.mrb[5].mxu1  ;;  %813 = vst [vmem:[%s1194_s10 + $0x8] sm:$0xff] %v781_v51   ;;  %v380_v60 = vadd.f32 %v718_v28, %v379_v57 }
  0xfe   : > { %817 = vst [vmem:[%s1194_s10 + $0x28] sm:$0xff] %v801_v52   ;;  %v420_v61 = vadd.f32 %v718_v28, %v419_v59  ;;  %v443_v13 = vmul.f32 %v385_v56, %v385_v56 }
  0xff   : > { %v786_v63 = vpack.c.bf16 %v385_v56, %v380_v60  ;;  %v871_v1 = vpop.f32.mrb[6].mxu0  ;;  %v442_v14 = vmul.f32 %v380_v60, %v380_v60  ;;  %v451_v15 = vmul.f32 %v425_v58, %v425_v58 }
 0x100   : > { %v806_v0 = vpack.c.bf16 %v425_v58, %v420_v61  ;;  %v883_v2 = vpop.f32.mrb[6].mxu1  ;;  %470 = vadd.xlane.f32.xlu0 %v446_v62  ;;  %v395_v3 = vadd.f32 %v871_v1, %v718_v28  ;;  %v389_v4 = vpop.f32.mrb[7].mxu0  ;;  %v450_v16 = vmul.f32 %v420_v61, %v420_v61 }
 0x101   : > { %476 = vadd.xlane.f32.xlu1 %v449_v55  ;;  %v435_v5 = vadd.f32 %v883_v2, %v718_v28  ;;  %v429_v6 = vpop.f32.mrb[7].mxu1  ;;  %814 = vst [vmem:[%s1194_s10 + $0x10] sm:$0xff] %v786_v63   ;;  %v390_v7 = vadd.f32 %v718_v28, %v389_v4 }
 0x102   : > { %818 = vst [vmem:[%s1194_s10 + $0x30] sm:$0xff] %v806_v0   ;;  %v430_v8 = vadd.f32 %v718_v28, %v429_v6  ;;  %v445_v17 = vmul.f32 %v395_v3, %v395_v3 }
 0x103   : > { %v791_v11 = vpack.c.bf16 %v395_v3, %v390_v7  ;;  %v444_v18 = vmul.f32 %v390_v7, %v390_v7  ;;  %v453_v19 = vmul.f32 %v435_v5, %v435_v5 }
 0x104   : > { %v811_v12 = vpack.c.bf16 %v435_v5, %v430_v8  ;;  %474 = vadd.xlane.f32.xlu0 %v448_v10  ;;  %v452_v20 = vmul.f32 %v430_v8, %v430_v8 }
 0x105   : > { %458 = vadd.xlane.f32.xlu1 %v440_v9  ;;  %815 = vst [vmem:[%s1194_s10 + $0x18] sm:$0xff] %v791_v11  }
 0x106   : > { %819 = vst [vmem:[%s1194_s10 + $0x38] sm:$0xff] %v811_v12  }
 0x108   : > { %462 = vadd.xlane.f32.xlu0 %v442_v14 }
 0x109   : > { %464 = vadd.xlane.f32.xlu1 %v443_v13 }
 0x10c   : > { %478 = vadd.xlane.f32.xlu0 %v450_v16 }
 0x10d   : > { %480 = vadd.xlane.f32.xlu1 %v451_v15 }
 0x110   : > { %466 = vadd.xlane.f32.xlu0 %v444_v18 }
 0x111   : > { %468 = vadd.xlane.f32.xlu1 %v445_v17 }
 0x114   : > { %482 = vadd.xlane.f32.xlu0 %v452_v20 }
 0x115   : > { %484 = vadd.xlane.f32.xlu1 %v453_v19 }
 0x116   : > { %994 = shalt.err (!%p991_p3)
}
 0x117   : > { %s995_s30 = scalar_lea.hbm %s1209_s22, 1024  ;;  %s999_s8 = scalar_lea.hbm %s1298_s3, 4096 }
 0x118   : > { %p996_p4 = scmp.ne.s32.totalorder %s1209_s22, %s995_s30  ;;  %p1000_p9 = scmp.lt.u32.totalorder %s1209_s22, %s1298_s3 }
 0x119   : > { %p1001_p10 = scmp.lt.u32.totalorder %s999_s8, %s995_s30  ;;  %p1003_p12 = scmp.lt.u32.totalorder %s995_s30, %s1209_s22 }
 0x11a   : > { %p997_p7 = pnand %p996_p4, %p1111_p5 }
 0x11b   : > { %p1002_p11 = por %p1001_p10, %p1000_p9 }
 0x11c   : > { %p998_p8 = pneg %p997_p7 }
 0x11d   : > { %p1004_p13 = por %p1003_p12, %p1002_p11 }
 0x11f   : > { %p1005_p0 = pnand %p1004_p13, %p998_p8 }
 0x121   : > { %1008 = shalt.err (!%p1005_p0)
}
 0x122   : > { %s1046_s11 = smov 64   ;;  %s1047_s13 = smov 4   ;;  %vm502_vm1 = vcmask 7168  }
 0x123   : > { %908 = dma.vmem_to_hbm [thread:$0]  (%p1111_p5), %s1211_s12, 1024, %s1209_s22, %s1215_s23, %s1046_s11, %s1046_s11, %s1047_s13  }
 0x124   : > { %s1244_s19 = scalar_lea.vmem %s1299_s4, %s715_s14 }
 0x185   : > { %v457_v22 = vpop.xlane.xlu0 %456 }
 0x186   : > { %v473_v21 = vpop.xlane.xlu1 %472 }
 0x187   : > { %949 = vrsqrt.f32 %v473_v21 }
 0x188   : > { %951 = vrsqrt.f32 %v457_v22 }
 0x189   : > { %v455_v24 = vpop.xlane.xlu0 %454 }
 0x18a   : > { %v461_v23 = vpop.xlane.xlu1 %460 }
 0x18b   : > { %953 = vrsqrt.f32 %v461_v23 }
 0x18c   : > { %955 = vrsqrt.f32 %v455_v24 }
 0x18d   : > { %v471_v26 = vpop.xlane.xlu0 %470 }
 0x18e   : > { %v477_v25 = vpop.xlane.xlu1 %476 }
 0x18f   : > { %957 = vrsqrt.f32 %v477_v25 }
 0x190   : > { %959 = vrsqrt.f32 %v471_v26 }
 0x191   : > { %v950_v27 = vpop.eup %949  ;;  %v475_v30 = vpop.xlane.xlu0 %474 }
 0x192   : > { %v952_v28 = vpop.eup %951  ;;  %512 = vst.msk [vmem:[%s1244_s19 + $0x48] sm:$0xff] %vm502_vm1, %v950_v27  ;;  %v459_v29 = vpop.xlane.xlu1 %458 }
 0x193   : > { %504 = vst.msk [vmem:[%s1244_s19 + $0x8] sm:$0xff] %vm502_vm1, %v952_v28  ;;  %961 = vrsqrt.f32 %v459_v29 }
 0x194   : > { %963 = vrsqrt.f32 %v475_v30 }
 0x195   : > { %v954_v31 = vpop.eup %953  ;;  %v463_v34 = vpop.xlane.xlu0 %462 }
 0x196   : > { %v956_v32 = vpop.eup %955  ;;  %506 = vst.msk [vmem:[%s1244_s19 + $0x18] sm:$0xff] %vm502_vm1, %v954_v31  ;;  %v465_v33 = vpop.xlane.xlu1 %464 }
 0x197   : > { %503 = vst.msk [vmem:[%s1244_s19] sm:$0xff] %vm502_vm1, %v956_v32  ;;  %965 = vrsqrt.f32 %v465_v33 }
 0x198   : > { %967 = vrsqrt.f32 %v463_v34 }
 0x199   : > { %v958_v35 = vpop.eup %957  ;;  %v479_v38 = vpop.xlane.xlu0 %478 }
 0x19a   : > { %v960_v36 = vpop.eup %959  ;;  %514 = vst.msk [vmem:[%s1244_s19 + $0x58] sm:$0xff] %vm502_vm1, %v958_v35  ;;  %v481_v37 = vpop.xlane.xlu1 %480 }
 0x19b   : > { %511 = vst.msk [vmem:[%s1244_s19 + $0x40] sm:$0xff] %vm502_vm1, %v960_v36  ;;  %969 = vrsqrt.f32 %v481_v37 }
 0x19c   : > { %971 = vrsqrt.f32 %v479_v38 }
 0x19d   : > { %v962_v39 = vpop.eup %961  ;;  %v467_v42 = vpop.xlane.xlu0 %466 }
 0x19e   : > { %v964_v40 = vpop.eup %963  ;;  %505 = vst.msk [vmem:[%s1244_s19 + $0x10] sm:$0xff] %vm502_vm1, %v962_v39  ;;  %v469_v41 = vpop.xlane.xlu1 %468 }
 0x19f   : > { %513 = vst.msk [vmem:[%s1244_s19 + $0x50] sm:$0xff] %vm502_vm1, %v964_v40  ;;  %973 = vrsqrt.f32 %v469_v41 }
 0x1a0   : > { %975 = vrsqrt.f32 %v467_v42 }
 0x1a1   : > { %v966_v43 = vpop.eup %965  ;;  %v483_v46 = vpop.xlane.xlu0 %482 }
 0x1a2   : > { %v968_v44 = vpop.eup %967  ;;  %508 = vst.msk [vmem:[%s1244_s19 + $0x28] sm:$0xff] %vm502_vm1, %v966_v43  ;;  %v485_v45 = vpop.xlane.xlu1 %484 }
 0x1a3   : > { %507 = vst.msk [vmem:[%s1244_s19 + $0x20] sm:$0xff] %vm502_vm1, %v968_v44  ;;  %977 = vrsqrt.f32 %v485_v45 }
 0x1a4   : > { %979 = vrsqrt.f32 %v483_v46 }
 0x1a5   : > { %v970_v47 = vpop.eup %969 }
 0x1a6   : > { %v972_v48 = vpop.eup %971  ;;  %516 = vst.msk [vmem:[%s1244_s19 + $0x68] sm:$0xff] %vm502_vm1, %v970_v47 }
 0x1a7   : > { %515 = vst.msk [vmem:[%s1244_s19 + $0x60] sm:$0xff] %vm502_vm1, %v972_v48 }
 0x1a9   : > { %v974_v49 = vpop.eup %973 }
 0x1aa   : > { %v976_v50 = vpop.eup %975  ;;  %510 = vst.msk [vmem:[%s1244_s19 + $0x38] sm:$0xff] %vm502_vm1, %v974_v49 }
 0x1ab   : > { %509 = vst.msk [vmem:[%s1244_s19 + $0x30] sm:$0xff] %vm502_vm1, %v976_v50 }
 0x1ad   : > { %v978_v51 = vpop.eup %977 }
 0x1ae   : > { %v980_v52 = vpop.eup %979  ;;  %518 = vst.msk [vmem:[%s1244_s19 + $0x78] sm:$0xff] %vm502_vm1, %v978_v51 }
 0x1af   : > { %517 = vst.msk [vmem:[%s1244_s19 + $0x70] sm:$0xff] %vm502_vm1, %v980_v52 }
 0x1b0 PF: > { %p914_p5 = scmp.ge.s32.totalorder %s1043_s18, 2  ;;  %s637_s25 = sand.u32 1, %s1031_s15  }
 0x1b1   : > { %s638_s7 = scalar_lea.sflag [#allocation3], %s637_s25 }
 0x1b2   : > { %p911_p1 = pnand %p914_p5, %p1115_p6 }
 0x1b4   : > { %1026 = dma.done.wait (!%p911_p1), %s638_s7, 1024  }
 0x1b5   : > { %1028 = vsyncadd (!%p911_p1), %s638_s7, 4294966272  ;;  %p15_p2 = scmp.ge.s32.totalorder %s1098_s21, 6   ;;  %s1302_s15 = smov %s1035_s16 }
 0x1b6   : > { %s1303_s16 = smov %s1039_s17  ;;  %s1304_s17 = smov %s1109_s24 }
 0x1b7   : > { %s1305_s18 = smov %s1098_s21  ;;  %17 = sbr.rel (!%p15_p2) target bundleno = 3 (0x3), region = 79 }
 0x1be   :  { %651 = vsyncpa [#allocation3], 1 }
 0x1bf   :  { %653 = vsyncpa [#allocation3 + $0x1], 1 }

</bundles_post_ra>
